<compile_context>
chip_gen: v5e
topology: v5e:2x2
jax: 0.10.0
libtpu: 0.0.40
codegen_flags: <defaults>
</compile_context>

<pallas_src>
import functools

import jax
import jax.numpy as jnp
from jax import lax
from jax.experimental import pallas as pl
from jax.experimental.pallas import tpu as pltpu

EPS = 1e-5


def _bn_train(x, inv_n):
    """Train-mode BatchNorm2d (gamma=1, beta=0) per row of a [C, N*H*W] slab.

    Single-pass stats: biased var = E[x^2] - E[x]^2 (f32 accumulation).
    """
    s1 = jnp.sum(x, axis=1, keepdims=True)
    s2 = jnp.sum(x * x, axis=1, keepdims=True)
    mu = s1 * inv_n
    var = s2 * inv_n - mu * mu
    return (x - mu) * lax.rsqrt(var + EPS)


def block_up_kernel(N, H, W, x_ref, w1t_ref, w2big_ref, wcomb_ref, border_ref,
                    out_ref):
    """Whole Block_up forward, channel-major / spatial-on-lanes, VMEM resident.

    x_ref      : (Cin, N*H*W)       input slab (channels on sublanes)
    w1t_ref    : (P, Cin)           deconv1 (1x1) as (out, in) matmul
    w2big_ref  : (P, 9*P)           deconv2 im2col weight (out x [tap, in])
    wcomb_ref  : (2*Pout, P + Cin)  block-diag [deconv3 | shortcut] weight
    border_ref : (4, N*H*W)         f32 masks [h>=1, h<=H-2, w>=1, w<=W-2]
    out_ref    : (N, Pout, H*W)     lane-dense output (HW on lanes)
    """
    P = w1t_ref.shape[0]
    Pout = out_ref.shape[1]
    HW = H * W
    NHW = N * HW
    inv_n = 1.0 / NHW

    x2d = x_ref[...]                                     # (Cin, NHW)

    # ---- deconv1 (1x1 transposed conv == channel matmul) + bn1 + relu -----
    o1 = jnp.dot(w1t_ref[...], x2d, preferred_element_type=jnp.float32)
    o1 = jnp.maximum(_bn_train(o1, inv_n), 0.0)          # (P, NHW)

    # ---- deconv2: 3x3 / stride 1 / pad 1 transposed conv ------------------
    # == "same" correlation with the flipped kernel, realized as ONE im2col
    # matmul: 9 lane rotations (XLU) of o1, border-masked, concatenated along
    # the channel (sublane) axis into a (9*P, NHW) slab -> K = 144.
    mh = {-1: border_ref[0:1, :], 0: None, 1: border_ref[1:2, :]}
    mw = {-1: border_ref[2:3, :], 0: None, 1: border_ref[3:4, :]}
    patches = []
    for dh in (-1, 0, 1):
        for dw in (-1, 0, 1):
            shift = (-(dh * W + dw)) % NHW               # static python int
            p = pltpu.roll(o1, shift=shift, axis=1) if shift else o1
            if mh[dh] is not None:
                p = p * mh[dh]
            if mw[dw] is not None:
                p = p * mw[dw]
            patches.append(p)
    slab = jnp.concatenate(patches, axis=0)              # (9*P, NHW)

    o2 = jnp.dot(w2big_ref[...], slab, preferred_element_type=jnp.float32)
    o2 = jnp.maximum(_bn_train(o2, inv_n), 0.0)          # (P, NHW)

    # ---- fused [deconv3 | shortcut] 1x1 convs + per-channel BN -------------
    comb = jnp.concatenate([o2, x2d], axis=0)            # (P + Cin, NHW)
    y = _bn_train(jnp.dot(wcomb_ref[...], comb,
                          preferred_element_type=jnp.float32), inv_n)

    # ---- residual add + final relu -----------------------------------------
    res = jnp.maximum(y[:Pout, :] + y[Pout:, :], 0.0)    # (Pout, NHW)

    # Lane-dense store: one (Pout, HW) slab per image.
    for n in range(N):
        out_ref[n] = res[:, n * HW:(n + 1) * HW]
    # TODO(synk): a v7x megacore grid split would need cross-core partial-sum
    # reduction of the BatchNorm statistics; kept single-core (overhead-bound
    # at this size).


def block_up_forward(x_nchw, W1, W2, W3, Ws):
    """NCHW in / NCHW out wrapper. Weights in torch ConvTranspose2d layout
    (in_channels, out_channels, kH, kW)."""
    N, Cin, H, W = x_nchw.shape
    P = W1.shape[1]
    Pout = W3.shape[1]
    NHW = N * H * W

    # Channel-major, spatial-on-lanes input slab.
    x2d = jnp.transpose(x_nchw, (1, 0, 2, 3)).reshape(Cin, NHW)

    # 1x1 transposed convs as (out, in) matmuls.
    w1t = W1[:, :, 0, 0].T                               # (P, Cin)
    w3t = W3[:, :, 0, 0].T                               # (Pout, P)
    wst = Ws[:, :, 0, 0].T                               # (Pout, Cin)

    # 3x3, s=1, p=1 transposed conv == "same" correlation with flipped kernel:
    # w_conv[o, c, dh, dw] = W2[c, o, 2-dh, 2-dw]; packed to (P, 9*P) so that
    # column block t = dh*3 + dw holds the (out, in) tap matrix.
    w_conv = jnp.transpose(W2[:, :, ::-1, ::-1], (1, 0, 2, 3))
    w2big = jnp.transpose(w_conv, (0, 2, 3, 1)).reshape(P, 9 * P)

    # Block-diagonal fused [deconv3 | shortcut] weight.
    wcomb = jnp.zeros((2 * Pout, P + Cin), jnp.float32)
    wcomb = wcomb.at[:Pout, :P].set(w3t)
    wcomb = wcomb.at[Pout:, P:].set(wst)

    # Border masks for the 3x3 taps (rows: h>=1, h<=H-2, w>=1, w<=W-2).
    idx = jnp.arange(NHW, dtype=jnp.int32)
    w_idx = idx % W
    h_idx = (idx // W) % H
    border = jnp.stack([h_idx >= 1, h_idx <= H - 2,
                        w_idx >= 1, w_idx <= W - 2]).astype(jnp.float32)

    kernel = functools.partial(block_up_kernel, N, H, W)
    out = pl.pallas_call(
        kernel,
        out_shape=jax.ShapeDtypeStruct((N, Pout, H * W), jnp.float32),
        in_specs=[pl.BlockSpec(memory_space=pltpu.MemorySpace.VMEM)] * 5,
        out_specs=pl.BlockSpec(memory_space=pltpu.MemorySpace.VMEM),
    )(x2d, w1t, w2big, wcomb, border)

    # NCHW is a free reshape (no transpose) thanks to the (N, Pout, H*W) spec.
    return out.reshape(N, Pout, H, W)


# ---------------------------------------------------------------------------
# Pure-JAX reference (same math as the torch module in train mode).
# ---------------------------------------------------------------------------
def _ref_bn(x):
    mu = jnp.mean(x, axis=(0, 1, 2), keepdims=True)
    var = jnp.mean((x - mu) ** 2, axis=(0, 1, 2), keepdims=True)
    return (x - mu) / jnp.sqrt(var + EPS)


def block_up_reference(x_nchw, W1, W2, W3, Ws):
    N, Cin, H, W = x_nchw.shape
    P = W1.shape[1]
    x = jnp.transpose(x_nchw, (0, 2, 3, 1))                      # NHWC
    o1 = jnp.maximum(_ref_bn(x @ W1[:, :, 0, 0]), 0.0)
    w_conv = jnp.transpose(W2[:, :, ::-1, ::-1], (2, 3, 0, 1))   # HWIO
    pad = jnp.pad(o1, ((0, 0), (1, 1), (1, 1), (0, 0)))
    acc = jnp.zeros((N, H, W, P), jnp.float32)
    for ki in range(3):
        for kj in range(3):
            acc = acc + pad[:, ki:ki + H, kj:kj + W, :] @ w_conv[ki, kj]
    o2 = jnp.maximum(_ref_bn(acc), 0.0)
    o3 = _ref_bn(o2 @ W3[:, :, 0, 0])
    sc = _ref_bn(x @ Ws[:, :, 0, 0])
    out = jnp.maximum(o3 + sc, 0.0)
    return jnp.transpose(out, (0, 3, 1, 2))                      # NCHW


def xavier_normal(key, shape):
    """torch.nn.init.xavier_normal_ for a ConvTranspose2d weight (in,out,kh,kw)."""
    in_ch, out_ch, kh, kw = shape
    fan_in = out_ch * kh * kw
    fan_out = in_ch * kh * kw
    std = (2.0 / (fan_in + fan_out)) ** 0.5
    return std * jax.random.normal(key, shape, jnp.float32)


if __name__ == "__main__":
    # Block_up(in_planes=8, planes=16, stride=1): expansion=4 -> 4 out channels,
    # in_planes != planes/4 so the shortcut has its own 1x1 deconv + BN.
    N, Cin, H, W = 2, 8, 16, 16
    planes = 16
    Pout = planes // 4

    key = jax.random.PRNGKey(0)
    k_x, k1, k2, k3, ks = jax.random.split(key, 5)

    x = jax.random.normal(k_x, (N, Cin, H, W), jnp.float32)

    # ConvTranspose2d weights, shape (in_channels, out_channels, kH, kW).
    W1 = xavier_normal(k1, (Cin, planes, 1, 1))
    W2 = xavier_normal(k2, (planes, planes, 3, 3))
    W3 = xavier_normal(k3, (planes, Pout, 1, 1))
    Ws = xavier_normal(ks, (Cin, Pout, 1, 1))

    out = block_up_forward(x, W1, W2, W3, Ws)
    out = jax.block_until_ready(out)

    assert out.shape == (N, Pout, H, W), out.shape
    assert bool(jnp.all(jnp.isfinite(out)))
    assert bool(jnp.all(out >= 0.0))  # final ReLU

    ref = block_up_reference(x, W1, W2, W3, Ws)
    err = float(jnp.max(jnp.abs(out - ref)))
    assert err < 5e-2, err

    print("KERNEL_OK")
</pallas_src>

<mosaic_0001>
module attributes {stable_mosaic.version = 11 : i64} {
  func.func @block_up_kernel(%arg0: memref<8x512xf32, #tpu.memory_space<vmem>>, %arg1: memref<16x8xf32, #tpu.memory_space<vmem>>, %arg2: memref<16x144xf32, #tpu.memory_space<vmem>>, %arg3: memref<8x24xf32, #tpu.memory_space<vmem>>, %arg4: memref<4x512xf32, #tpu.memory_space<vmem>>, %arg5: memref<2x4x256xf32, #tpu.memory_space<vmem>>) attributes {dimension_semantics = [], scalar_prefetch = 0 : i64, scratch_operands = 0 : i64, tpu.core_type = #tpu.core_type<tc>} {
    %c0 = arith.constant 0 : index
    %c0_0 = arith.constant 0 : index
    %0 = vector.load %arg0[%c0, %c0_0] : memref<8x512xf32, #tpu.memory_space<vmem>>, vector<8x512xf32>
    %c0_1 = arith.constant 0 : index
    %c0_2 = arith.constant 0 : index
    %1 = vector.load %arg1[%c0_1, %c0_2] : memref<16x8xf32, #tpu.memory_space<vmem>>, vector<16x8xf32>
    %cst = arith.constant dense<0.000000e+00> : vector<16x512xf32>
    %2 = tpu.matmul %1, %0, %cst {dimension_numbers = #tpu.dot_dimension_numbers<[1], [0], [0], [1], [0, 0, 1, 1], [], []>} : vector<16x8xf32>, vector<8x512xf32>, vector<16x512xf32> -> vector<16x512xf32>
    %cst_3 = arith.constant dense<0.000000e+00> : vector<16xf32>
    %3 = vector.multi_reduction <add>, %2, %cst_3 [1] : vector<16x512xf32> to vector<16xf32>
    %4 = vector.shape_cast %3 : vector<16xf32> to vector<16x1xf32>
    %5 = arith.mulf %2, %2 : vector<16x512xf32>
    %cst_4 = arith.constant dense<0.000000e+00> : vector<16xf32>
    %6 = vector.multi_reduction <add>, %5, %cst_4 [1] : vector<16x512xf32> to vector<16xf32>
    %7 = vector.shape_cast %6 : vector<16xf32> to vector<16x1xf32>
    %cst_5 = arith.constant 0.001953125 : f32
    %8 = vector.broadcast %cst_5 : f32 to vector<16x1xf32>
    %9 = arith.mulf %4, %8 : vector<16x1xf32>
    %cst_6 = arith.constant 0.001953125 : f32
    %10 = vector.broadcast %cst_6 : f32 to vector<16x1xf32>
    %11 = arith.mulf %7, %10 : vector<16x1xf32>
    %12 = arith.mulf %9, %9 : vector<16x1xf32>
    %13 = arith.subf %11, %12 : vector<16x1xf32>
    %14 = vector.broadcast %9 : vector<16x1xf32> to vector<16x512xf32>
    %15 = arith.subf %2, %14 : vector<16x512xf32>
    %cst_7 = arith.constant 9.99999974E-6 : f32
    %16 = vector.broadcast %cst_7 : f32 to vector<16x1xf32>
    %17 = arith.addf %13, %16 : vector<16x1xf32>
    %18 = math.rsqrt %17 : vector<16x1xf32>
    %19 = vector.broadcast %18 : vector<16x1xf32> to vector<16x512xf32>
    %20 = arith.mulf %15, %19 : vector<16x512xf32>
    %cst_8 = arith.constant 0.000000e+00 : f32
    %21 = vector.broadcast %cst_8 : f32 to vector<16x512xf32>
    %22 = arith.maximumf %20, %21 : vector<16x512xf32>
    %c0_9 = arith.constant 0 : index
    %c0_10 = arith.constant 0 : index
    %23 = vector.load %arg4[%c0_9, %c0_10] : memref<4x512xf32, #tpu.memory_space<vmem>>, vector<1x512xf32>
    %c1 = arith.constant 1 : index
    %c0_11 = arith.constant 0 : index
    %24 = vector.load %arg4[%c1, %c0_11] : memref<4x512xf32, #tpu.memory_space<vmem>>, vector<1x512xf32>
    %c2 = arith.constant 2 : index
    %c0_12 = arith.constant 0 : index
    %25 = vector.load %arg4[%c2, %c0_12] : memref<4x512xf32, #tpu.memory_space<vmem>>, vector<1x512xf32>
    %c3 = arith.constant 3 : index
    %c0_13 = arith.constant 0 : index
    %26 = vector.load %arg4[%c3, %c0_13] : memref<4x512xf32, #tpu.memory_space<vmem>>, vector<1x512xf32>
    %c17_i32 = arith.constant 17 : i32
    %27 = tpu.dynamic_rotate %22 by %c17_i32 dim 1 : vector<16x512xf32>, i32 -> vector<16x512xf32>
    %28 = vector.broadcast %23 : vector<1x512xf32> to vector<16x512xf32>
    %29 = arith.mulf %27, %28 : vector<16x512xf32>
    %30 = vector.broadcast %25 : vector<1x512xf32> to vector<16x512xf32>
    %31 = arith.mulf %29, %30 : vector<16x512xf32>
    %c16_i32 = arith.constant 16 : i32
    %32 = tpu.dynamic_rotate %22 by %c16_i32 dim 1 : vector<16x512xf32>, i32 -> vector<16x512xf32>
    %33 = vector.broadcast %23 : vector<1x512xf32> to vector<16x512xf32>
    %34 = arith.mulf %32, %33 : vector<16x512xf32>
    %c15_i32 = arith.constant 15 : i32
    %35 = tpu.dynamic_rotate %22 by %c15_i32 dim 1 : vector<16x512xf32>, i32 -> vector<16x512xf32>
    %36 = vector.broadcast %23 : vector<1x512xf32> to vector<16x512xf32>
    %37 = arith.mulf %35, %36 : vector<16x512xf32>
    %38 = vector.broadcast %26 : vector<1x512xf32> to vector<16x512xf32>
    %39 = arith.mulf %37, %38 : vector<16x512xf32>
    %c1_i32 = arith.constant 1 : i32
    %40 = tpu.dynamic_rotate %22 by %c1_i32 dim 1 : vector<16x512xf32>, i32 -> vector<16x512xf32>
    %41 = vector.broadcast %25 : vector<1x512xf32> to vector<16x512xf32>
    %42 = arith.mulf %40, %41 : vector<16x512xf32>
    %c511_i32 = arith.constant 511 : i32
    %43 = tpu.dynamic_rotate %22 by %c511_i32 dim 1 : vector<16x512xf32>, i32 -> vector<16x512xf32>
    %44 = vector.broadcast %26 : vector<1x512xf32> to vector<16x512xf32>
    %45 = arith.mulf %43, %44 : vector<16x512xf32>
    %c497_i32 = arith.constant 497 : i32
    %46 = tpu.dynamic_rotate %22 by %c497_i32 dim 1 : vector<16x512xf32>, i32 -> vector<16x512xf32>
    %47 = vector.broadcast %24 : vector<1x512xf32> to vector<16x512xf32>
    %48 = arith.mulf %46, %47 : vector<16x512xf32>
    %49 = vector.broadcast %25 : vector<1x512xf32> to vector<16x512xf32>
    %50 = arith.mulf %48, %49 : vector<16x512xf32>
    %c496_i32 = arith.constant 496 : i32
    %51 = tpu.dynamic_rotate %22 by %c496_i32 dim 1 : vector<16x512xf32>, i32 -> vector<16x512xf32>
    %52 = vector.broadcast %24 : vector<1x512xf32> to vector<16x512xf32>
    %53 = arith.mulf %51, %52 : vector<16x512xf32>
    %c495_i32 = arith.constant 495 : i32
    %54 = tpu.dynamic_rotate %22 by %c495_i32 dim 1 : vector<16x512xf32>, i32 -> vector<16x512xf32>
    %55 = vector.broadcast %24 : vector<1x512xf32> to vector<16x512xf32>
    %56 = arith.mulf %54, %55 : vector<16x512xf32>
    %57 = vector.broadcast %26 : vector<1x512xf32> to vector<16x512xf32>
    %58 = arith.mulf %56, %57 : vector<16x512xf32>
    %59 = tpu.concatenate %31, %34, %39, %42, %22, %45, %50, %53, %58 in 0 : vector<16x512xf32>, vector<16x512xf32>, vector<16x512xf32>, vector<16x512xf32>, vector<16x512xf32>, vector<16x512xf32>, vector<16x512xf32>, vector<16x512xf32>, vector<16x512xf32> -> vector<144x512xf32>
    %c0_14 = arith.constant 0 : index
    %c0_15 = arith.constant 0 : index
    %60 = vector.load %arg2[%c0_14, %c0_15] : memref<16x144xf32, #tpu.memory_space<vmem>>, vector<16x144xf32>
    %cst_16 = arith.constant dense<0.000000e+00> : vector<16x512xf32>
    %61 = tpu.matmul %60, %59, %cst_16 {dimension_numbers = #tpu.dot_dimension_numbers<[1], [0], [0], [1], [0, 0, 1, 1], [], []>} : vector<16x144xf32>, vector<144x512xf32>, vector<16x512xf32> -> vector<16x512xf32>
    %cst_17 = arith.constant dense<0.000000e+00> : vector<16xf32>
    %62 = vector.multi_reduction <add>, %61, %cst_17 [1] : vector<16x512xf32> to vector<16xf32>
    %63 = vector.shape_cast %62 : vector<16xf32> to vector<16x1xf32>
    %64 = arith.mulf %61, %61 : vector<16x512xf32>
    %cst_18 = arith.constant dense<0.000000e+00> : vector<16xf32>
    %65 = vector.multi_reduction <add>, %64, %cst_18 [1] : vector<16x512xf32> to vector<16xf32>
    %66 = vector.shape_cast %65 : vector<16xf32> to vector<16x1xf32>
    %cst_19 = arith.constant 0.001953125 : f32
    %67 = vector.broadcast %cst_19 : f32 to vector<16x1xf32>
    %68 = arith.mulf %63, %67 : vector<16x1xf32>
    %cst_20 = arith.constant 0.001953125 : f32
    %69 = vector.broadcast %cst_20 : f32 to vector<16x1xf32>
    %70 = arith.mulf %66, %69 : vector<16x1xf32>
    %71 = arith.mulf %68, %68 : vector<16x1xf32>
    %72 = arith.subf %70, %71 : vector<16x1xf32>
    %73 = vector.broadcast %68 : vector<16x1xf32> to vector<16x512xf32>
    %74 = arith.subf %61, %73 : vector<16x512xf32>
    %cst_21 = arith.constant 9.99999974E-6 : f32
    %75 = vector.broadcast %cst_21 : f32 to vector<16x1xf32>
    %76 = arith.addf %72, %75 : vector<16x1xf32>
    %77 = math.rsqrt %76 : vector<16x1xf32>
    %78 = vector.broadcast %77 : vector<16x1xf32> to vector<16x512xf32>
    %79 = arith.mulf %74, %78 : vector<16x512xf32>
    %cst_22 = arith.constant 0.000000e+00 : f32
    %80 = vector.broadcast %cst_22 : f32 to vector<16x512xf32>
    %81 = arith.maximumf %79, %80 : vector<16x512xf32>
    %82 = tpu.concatenate %81, %0 in 0 : vector<16x512xf32>, vector<8x512xf32> -> vector<24x512xf32>
    %c0_23 = arith.constant 0 : index
    %c0_24 = arith.constant 0 : index
    %83 = vector.load %arg3[%c0_23, %c0_24] : memref<8x24xf32, #tpu.memory_space<vmem>>, vector<8x24xf32>
    %cst_25 = arith.constant dense<0.000000e+00> : vector<8x512xf32>
    %84 = tpu.matmul %83, %82, %cst_25 {dimension_numbers = #tpu.dot_dimension_numbers<[1], [0], [0], [1], [0, 0, 1, 1], [], []>} : vector<8x24xf32>, vector<24x512xf32>, vector<8x512xf32> -> vector<8x512xf32>
    %cst_26 = arith.constant dense<0.000000e+00> : vector<8xf32>
    %85 = vector.multi_reduction <add>, %84, %cst_26 [1] : vector<8x512xf32> to vector<8xf32>
    %86 = vector.shape_cast %85 : vector<8xf32> to vector<8x1xf32>
    %87 = arith.mulf %84, %84 : vector<8x512xf32>
    %cst_27 = arith.constant dense<0.000000e+00> : vector<8xf32>
    %88 = vector.multi_reduction <add>, %87, %cst_27 [1] : vector<8x512xf32> to vector<8xf32>
    %89 = vector.shape_cast %88 : vector<8xf32> to vector<8x1xf32>
    %cst_28 = arith.constant 0.001953125 : f32
    %90 = vector.broadcast %cst_28 : f32 to vector<8x1xf32>
    %91 = arith.mulf %86, %90 : vector<8x1xf32>
    %cst_29 = arith.constant 0.001953125 : f32
    %92 = vector.broadcast %cst_29 : f32 to vector<8x1xf32>
    %93 = arith.mulf %89, %92 : vector<8x1xf32>
    %94 = arith.mulf %91, %91 : vector<8x1xf32>
    %95 = arith.subf %93, %94 : vector<8x1xf32>
    %96 = vector.broadcast %91 : vector<8x1xf32> to vector<8x512xf32>
    %97 = arith.subf %84, %96 : vector<8x512xf32>
    %cst_30 = arith.constant 9.99999974E-6 : f32
    %98 = vector.broadcast %cst_30 : f32 to vector<8x1xf32>
    %99 = arith.addf %95, %98 : vector<8x1xf32>
    %100 = math.rsqrt %99 : vector<8x1xf32>
    %101 = vector.broadcast %100 : vector<8x1xf32> to vector<8x512xf32>
    %102 = arith.mulf %97, %101 : vector<8x512xf32>
    %103 = vector.extract_strided_slice %102 {offsets = [0, 0], sizes = [4, 512], strides = [1, 1]} : vector<8x512xf32> to vector<4x512xf32>
    %104 = vector.extract_strided_slice %102 {offsets = [4, 0], sizes = [4, 512], strides = [1, 1]} : vector<8x512xf32> to vector<4x512xf32>
    %105 = arith.addf %103, %104 : vector<4x512xf32>
    %cst_31 = arith.constant 0.000000e+00 : f32
    %106 = vector.broadcast %cst_31 : f32 to vector<4x512xf32>
    %107 = arith.maximumf %105, %106 : vector<4x512xf32>
    %108 = vector.extract_strided_slice %107 {offsets = [0, 0], sizes = [4, 256], strides = [1, 1]} : vector<4x512xf32> to vector<4x256xf32>
    %c0_32 = arith.constant 0 : index
    %c0_33 = arith.constant 0 : index
    %c0_34 = arith.constant 0 : index
    %109 = vector.load %arg5[%c0_32, %c0_33, %c0_34] : memref<2x4x256xf32, #tpu.memory_space<vmem>>, vector<1x4x256xf32>
    %110 = vector.shape_cast %109 : vector<1x4x256xf32> to vector<4x256xf32>
    %111 = vector.shape_cast %108 : vector<4x256xf32> to vector<1x4x256xf32>
    tpu.vector_store %arg5[%c0_32, %c0_33, %c0_34], %111 {strides = array<i32>} : memref<2x4x256xf32, #tpu.memory_space<vmem>>, vector<1x4x256xf32>,
    %112 = vector.extract_strided_slice %107 {offsets = [0, 256], sizes = [4, 256], strides = [1, 1]} : vector<4x512xf32> to vector<4x256xf32>
    %c1_35 = arith.constant 1 : index
    %c0_36 = arith.constant 0 : index
    %c0_37 = arith.constant 0 : index
    %113 = vector.load %arg5[%c1_35, %c0_36, %c0_37] : memref<2x4x256xf32, #tpu.memory_space<vmem>>, vector<1x4x256xf32>
    %114 = vector.shape_cast %113 : vector<1x4x256xf32> to vector<4x256xf32>
    %115 = vector.shape_cast %112 : vector<4x256xf32> to vector<1x4x256xf32>
    tpu.vector_store %arg5[%c1_35, %c0_36, %c0_37], %115 {strides = array<i32>} : memref<2x4x256xf32, #tpu.memory_space<vmem>>, vector<1x4x256xf32>,
    return
  }
}

</mosaic_0001>

<bundles_post_ra>
// kernel: tpu_custom_call.1
= control target key start
LH: loop header
LB: loop body
LE: loop exit
PB: predicated region body
PF: predicated region fallthrough
CT: control target
= control target key end

     0   :  { %10 = vsyncpa [#allocation3], 0  ;;  %s1963_s0 = inlined_call_operand.hbm [shape: f32[8,512], index: 0, kind: input, shape index: {}]   ;;  %s1964_s1 = inlined_call_operand.vmem [shape: f32[16,8], index: 1, kind: input, shape index: {}]   ;;  %s1965_s2 = inlined_call_operand.hbm [shape: f32[16,144], index: 2, kind: input, shape index: {}]   ;;  %s1966_s3 = inlined_call_operand.vmem [shape: f32[8,24], index: 3, kind: input, shape index: {}]   ;;  %s1967_s4 = inlined_call_operand.vmem [shape: f32[4,512], index: 4, kind: input, shape index: {}]   ;;  %s1968_s5 = inlined_call_operand.hbm [shape: f32[2,4,256], index: 5, kind: output, shape index: {}]  }
   0x1   :  { %11 = vsyncpa [#allocation6], 0 }
   0x2   :  { %12 = vsyncpa [#allocation4], 0  ;;  %s18_s20 = sshll.u32 %s1963_s0, 4  ;;  %s1159_s21 = smov [#allocation2]   ;;  %s19_s20 = int_to_ptr.hbm [resolvable:$true] %s18_s20 }
   0x3   :  { %s20_s22 = sshll.u32 %s1159_s21, 4  ;;  %s30_s25 = sshll.u32 %s1965_s2, 4  ;;  %s21_s22 = int_to_ptr.vmem [resolvable:$true] %s20_s22  ;;  %s31_s25 = int_to_ptr.hbm [resolvable:$true] %s30_s25 }
   0x4   :  { %23 = dma.hbm_to_vmem [thread:$0]  %s19_s20, 512, %s21_s22, [#allocation3]  }
   0x5   :  { %s1160_s26 = smov [#allocation5]   ;;  %s1161_s28 = smov 256  }
   0x6   :  { %s32_s27 = sshll.u32 %s1160_s26, 4  ;;  %s1162_s29 = smov 16   ;;  %s33_s27 = int_to_ptr.vmem [resolvable:$true] %s32_s27 }
   0x7   :  { %38 = dma.hbm_to_vmem [thread:$0]  %s31_s25, 512, %s33_s27, [#allocation6], %s1161_s28, %s1161_s28, %s1162_s29  }
   0x8   :  { %1153 = dma.done.wait [#allocation3], 512  }
   0x9   :  { %1154 = vsyncadd [#allocation3], 4294966784 }
   0xa   :  { %1155 = dma.done.wait [#allocation6], 512  }
   0xb   :  { %1156 = vsyncadd [#allocation6], 4294966784  ;;  %vm57_vm0 = vcmask 64512   ;;  %v53_v0 = vld [vmem:[#allocation2 + $0x10] sm:$0xff]  ;;  %v55_v1 = vld [vmem:[%s1964_s1] sm:$0xff]  ;;  %s1164_s7 = smov 113  }
   0xc   :  { %v1213_v2 = vld [vmem:[#allocation2 + $0x18] sm:$0xff]  ;;  %125 = vmatpush.msra.mxu2 %v53_v0  ;;  %v1216_v3 = vld [vmem:[#allocation2] sm:$0xff]  ;;  %v52_v4 = vld [vmem:[#allocation2 + $0x8] sm:$0xff]  ;;  %s1165_s8 = smov 127   ;;  %s1166_s9 = smov 15   ;;  %vm583_vm15 = vcmask 130048  }
   0xd   :  { %1975 = vst [vmem:[#allocation11_spill] sm:$0xff] %v1213_v2  ;;  %148 = vmatpush.msra.mxu3 %v1213_v2  ;;  %1036 = vmatmul.msk.f32.vlgmr.msra.gmra.mxu2 %vm57_vm0, %v55_v1  ;;  %v56_v5 = vld [vmem:[%s1964_s1 + $0x8] sm:$0xff]  ;;  %s1163_s1 = smov 112   ;;  %s1167_s10 = smov 1  }
   0xe   :  { %1976 = vst [vmem:[#allocation12_spill] sm:$0xff] %v1216_v3  ;;  %1038 = vmatmul.msk.f32.vlgmr.msra.gmra.mxu3 %vm57_vm0, %v55_v1  ;;  %79 = vmatpush.msra.mxu0 %v1216_v3  ;;  %s1168_s11 = smov 111   ;;  %s1169_s12 = smov 17  }
   0xf   :  { %102 = vmatpush.msra.mxu1 %v52_v4  ;;  %1032 = vmatmul.msk.f32.vlgmr.msra.gmra.mxu0 %vm57_vm0, %v55_v1  ;;  %s1018_s25 = sshll.u32 %s1968_s5, 4  ;;  %s1171_s26 = smov 128   ;;  %s1019_s25 = int_to_ptr.hbm [resolvable:$true] %s1018_s25 }
  0x10   :  { %1034 = vmatmul.msk.f32.vlgmr.msra.gmra.mxu1 %vm57_vm0, %v55_v1  ;;  %s1172_s27 = smov 8  }
  0x15   :  { %1037 = vmatmul.msk.f32.gmra.mxu2 %vm57_vm0, %v56_v5 }
  0x16   :  { %1039 = vmatmul.msk.f32.gmra.mxu3 %vm57_vm0, %v56_v5 }
  0x17   :  { %1033 = vmatmul.msk.f32.gmra.mxu0 %vm57_vm0, %v56_v5 }
  0x18   :  { %1035 = vmatmul.msk.f32.gmra.mxu1 %vm57_vm0, %v56_v5 }
  0x8c   :  { %v81_v6 = vpop.f32.mrf.mxu0 }
  0x8d   :  { %v104_v7 = vpop.f32.mrf.mxu1  ;;  %v166_v8 = vmul.f32 %v81_v6, %v81_v6 }
  0x8e   :  { %v156_v9 = vadd.f32 %v104_v7, %v81_v6  ;;  %v167_v10 = vmul.f32 %v104_v7, %v104_v7 }
  0x90   :  { %v174_v11 = vadd.f32 %v167_v10, %v166_v8  ;;  %v127_v12 = vpop.f32.mrf.mxu2 }
  0x91   :  { %v1230_v13 = vpop.f32.mrf.mxu3  ;;  %v168_v14 = vmul.f32 %v127_v12, %v127_v12  ;;  %v157_v15 = vadd.f32 %v156_v9, %v127_v12 }
  0x92   :  { %v169_v16 = vmul.f32 %v1230_v13, %v1230_v13 }
  0x93   :  { %v158_v17 = vadd.f32 %v157_v15, %v1230_v13  ;;  %v175_v18 = vadd.f32 %v174_v11, %v168_v14 }
  0x94   :  { %v1235_v19 = vpop.f32.mrf.mxu0 }
  0x95   :  { %v1237_v20 = vpop.f32.mrf.mxu1  ;;  %159 = vadd.xlane.f32.xlu0 %v158_v17  ;;  %v170_v21 = vmul.f32 %v1235_v19, %v1235_v19  ;;  %v176_v24 = vadd.f32 %v175_v18, %v169_v16 }
  0x96   :  { %v161_v22 = vadd.f32 %v1237_v20, %v1235_v19  ;;  %v171_v23 = vmul.f32 %v1237_v20, %v1237_v20 }
  0x97   :  { %177 = vadd.xlane.f32.xlu1 %v176_v24 }
  0x98   :  { %v179_v25 = vadd.f32 %v171_v23, %v170_v21  ;;  %v1245_v26 = vpop.f32.mrf.mxu2 }
  0x99   :  { %v1247_v27 = vpop.f32.mrf.mxu3  ;;  %v172_v28 = vmul.f32 %v1245_v26, %v1245_v26  ;;  %v162_v29 = vadd.f32 %v161_v22, %v1245_v26  ;;  %v261_v22 = vlaneseq }
  0x9a   :  { %v173_v30 = vmul.f32 %v1247_v27, %v1247_v27 }
  0x9b   :  { %v163_v31 = vadd.f32 %v162_v29, %v1247_v27  ;;  %v180_v32 = vadd.f32 %v179_v25, %v172_v28  ;;  %v1346_v25 = vand.u32 127, %v261_v22 }
  0x9d   :  { %164 = vadd.xlane.f32.xlu0 %v163_v31  ;;  %v181_v33 = vadd.f32 %v180_v32, %v173_v30  ;;  %vm521_vm7 = vcmp.lt.s32.totalorder %v1346_v25, 112  ;;  %vm471_vm8 = vcmp.lt.s32.totalorder %v1346_v25, 113  ;;  %vm438_vm9 = vcmp.lt.s32.totalorder %v1346_v25, 127 }
  0x9e   :  { %vm355_vm10 = vcmp.lt.s32.totalorder %v1346_v25, 15  ;;  %vm405_vm11 = vcmp.lt.s32.totalorder %v1346_v25, 1  ;;  %vm263_vm12 = vcmp.lt.s32.totalorder %v1346_v25, 17  ;;  %vm554_vm13 = vcmp.lt.s32.totalorder %v1346_v25, 111 }
  0x9f   :  { %182 = vadd.xlane.f32.xlu1 %v181_v33  ;;  %vm322_vm14 = vcmp.lt.s32.totalorder %v1346_v25, 16 }
 0x108   :  { %v160_v34 = vpop.xlane.xlu0 %159 }
 0x109   :  { %v184_v35 = vmul.f32 0.001953125, %v160_v34 }
 0x10a   :  { %v178_v36 = vpop.xlane.xlu1 %177 }
 0x10b   :  { %v186_v37 = vmul.f32 0.001953125, %v178_v36  ;;  %v188_v38 = vmul.f32 %v184_v35, %v184_v35  ;;  %v192_v47 = vsub.f32 %v81_v6, %v184_v35  ;;  %v193_v48 = vsub.f32 %v104_v7, %v184_v35 }
 0x10c   :  { %v194_v49 = vsub.f32 %v127_v12, %v184_v35  ;;  %v195_v57 = vsub.f32 %v1230_v13, %v184_v35 }
 0x10d   :  { %v190_v39 = vsub.f32 %v186_v37, %v188_v38 }
 0x10f   :  { %v200_v40 = vadd.f32 1e-05, %v190_v39 }
 0x110   :  { %v165_v58 = vpop.xlane.xlu0 %164 }
 0x111   :  { %1069 = vrsqrt.f32 %v200_v40  ;;  %vm208_vm2 = vweird.f32 %v200_v40  ;;  %v185_v60 = vmul.f32 0.001953125, %v165_v58 }
 0x112   :  { %v183_v61 = vpop.xlane.xlu1 %182 }
 0x113   :  { %v187_v63 = vmul.f32 0.001953125, %v183_v61  ;;  %v189_v0 = vmul.f32 %v185_v60, %v185_v60  ;;  %v197_v12 = vsub.f32 %v1237_v20, %v185_v60  ;;  %v198_v15 = vsub.f32 %v1245_v26, %v185_v60 }
 0x114   :  { %v196_v18 = vsub.f32 %v1235_v19, %v185_v60  ;;  %v199_v23 = vsub.f32 %v1247_v27, %v185_v60 }
 0x115   :  { %v191_v1 = vsub.f32 %v187_v63, %v189_v0 }
 0x117   :  { %v1070_v41 = vpop.eup %1069  ;;  %v201_v4 = vadd.f32 1e-05, %v191_v1 }
 0x118   :  { %v203_v42 = vmul.f32 %v1070_v41, %v200_v40  ;;  %vm209_vm1 = vweird.f32 %v1070_v41  ;;  %v1403_v40 = vld [vmem:[%s1967_s4 + $0x1] ss:$4 sm:$0xf] }
 0x119   :  { %vm210_vm3 = vmor %vm208_vm2, %vm209_vm1  ;;  %1071 = vrsqrt.f32 %v201_v4  ;;  %vm218_vm4 = vweird.f32 %v201_v4 }
 0x11a   :  { %v204_v43 = vmul.f32 %v1070_v41, %v203_v42  ;;  %v1413_v42 = vperm.slane %v1403_v40, 3 }
 0x11c   :  { %v205_v44 = vmul.f32 0.5, %v204_v43 }
 0x11e   :  { %v206_v45 = vsub.f32 1.5, %v205_v44 }
 0x11f   :  { %v1072_v5 = vpop.eup %1071 }
 0x120   :  { %v207_v46 = vmul.f32 %v1070_v41, %v206_v45  ;;  %v213_v6 = vmul.f32 %v1072_v5, %v201_v4  ;;  %vm219_vm5 = vweird.f32 %v1072_v5 }
 0x121   :  { %vm220_vm6 = vmor %vm218_vm4, %vm219_vm5 }
 0x122   :  { %v211_v50 = vsel %vm210_vm3, %v1070_v41, %v207_v46  ;;  %v214_v7 = vmul.f32 %v1072_v5, %v213_v6  ;;  %v1410_v41 = vperm.slane %v1403_v40, 2 }
 0x123   :  { %v222_v51 = vmul.f32 %v211_v50, %v192_v47  ;;  %v223_v52 = vmul.f32 %v211_v50, %v193_v48  ;;  %v224_v53 = vmul.f32 %v211_v50, %v194_v49  ;;  %v225_v59 = vmul.f32 %v211_v50, %v195_v57 }
 0x124   :  { %v215_v8 = vmul.f32 0.5, %v214_v7 }
 0x125   :  { %v1255_v54 = vmax.f32 %v222_v51, 0.0  ;;  %v1257_v55 = vmax.f32 %v223_v52, 0.0  ;;  %v1259_v56 = vmax.f32 %v224_v53, 0.0  ;;  %v1280_v62 = vmax.f32 %v225_v59, 0.0 }
 0x126   :  { %v216_v9 = vsub.f32 1.5, %v215_v8 }
 0x127   :  { %509 = vrot.lane.b32.xlu2 %v1257_v55, %s1163_s1  ;;  %505 = vrot.lane.b32.xlu1 %v1255_v54, %s1163_s1  ;;  %1977 = vst [vmem:[#allocation13_spill] sm:$0xff] %v1280_v62 }
 0x128   :  { %463 = vrot.lane.b32.xlu0 %v1259_v56, %s1164_s7  ;;  %v217_v10 = vmul.f32 %v1072_v5, %v216_v9 }
 0x12a   :  { %v221_v11 = vsel %vm220_vm6, %v1072_v5, %v217_v10  ;;  %v1475_v5 = vld [vmem:[%s1967_s4 + $0x2] ss:$4 sm:$0xf]  ;;  %vm857_vm6 = vcmask 195584  }
 0x12b   :  { %v227_v13 = vmul.f32 %v221_v11, %v197_v12  ;;  %v228_v16 = vmul.f32 %v221_v11, %v198_v15  ;;  %v226_v20 = vmul.f32 %v221_v11, %v196_v18  ;;  %v229_v19 = vmul.f32 %v221_v11, %v199_v23 }
 0x12c   :  { %v1483_v8 = vperm.slane %v1475_v5, 3 }
 0x12d   :  { %v1319_v14 = vmax.f32 %v227_v13, 0.0  ;;  %v1328_v17 = vmax.f32 %v228_v16, 0.0  ;;  %v1337_v21 = vmax.f32 %v226_v20, 0.0  ;;  %v1348_v26 = vmax.f32 %v229_v19, 0.0 }
 0x12f   :  { %513 = vrot.lane.b32.xlu2 %v1259_v56, %s1163_s1  ;;  %455 = vrot.lane.b32.xlu1 %v1255_v54, %s1164_s7  ;;  %1978 = vst [vmem:[#allocation14_spill] sm:$0xff] %v1348_v26 }
 0x130   :  { %426 = vrot.lane.b32.xlu0 %v1257_v55, %s1165_s8 }
 0x137   :  { %459 = vrot.lane.b32.xlu2 %v1257_v55, %s1164_s7  ;;  %339 = vrot.lane.b32.xlu1 %v1255_v54, %s1166_s9 }
 0x138   :  { %422 = vrot.lane.b32.xlu0 %v1255_v54, %s1165_s8 }
 0x13f   :  { %430 = vrot.lane.b32.xlu2 %v1259_v56, %s1165_s8  ;;  %401 = vrot.lane.b32.xlu1 %v1280_v62, %s1167_s10 }
 0x140   :  { %389 = vrot.lane.b32.xlu0 %v1255_v54, %s1167_s10 }
 0x147   :  { %393 = vrot.lane.b32.xlu2 %v1257_v55, %s1167_s10  ;;  %306 = vrot.lane.b32.xlu1 %v1255_v54, %s1162_s29 }
 0x148   :  { %343 = vrot.lane.b32.xlu0 %v1257_v55, %s1166_s9 }
 0x14f   :  { %517 = vrot.lane.b32.xlu2 %v1280_v62, %s1163_s1  ;;  %542 = vrot.lane.b32.xlu1 %v1257_v55, %s1168_s11 }
 0x150   :  { %467 = vrot.lane.b32.xlu0 %v1280_v62, %s1164_s7 }
 0x157   :  { %351 = vrot.lane.b32.xlu2 %v1280_v62, %s1166_s9  ;;  %249 = vrot.lane.b32.xlu1 %v1257_v55, %s1169_s12 }
 0x158   :  { %310 = vrot.lane.b32.xlu0 %v1257_v55, %s1162_s29 }
 0x15f   :  { %245 = vrot.lane.b32.xlu2 %v1255_v54, %s1169_s12  ;;  %434 = vrot.lane.b32.xlu1 %v1280_v62, %s1165_s8 }
 0x160   :  { %546 = vrot.lane.b32.xlu0 %v1259_v56, %s1168_s11 }
 0x167   :  { %257 = vrot.lane.b32.xlu2 %v1280_v62, %s1169_s12  ;;  %318 = vrot.lane.b32.xlu1 %v1280_v62, %s1162_s29 }
 0x168   :  { %538 = vrot.lane.b32.xlu0 %v1255_v54, %s1168_s11 }
 0x16f   :  { %397 = vrot.lane.b32.xlu2 %v1259_v56, %s1167_s10  ;;  %347 = vrot.lane.b32.xlu1 %v1259_v56, %s1166_s9 }
 0x170   :  { %461 = vrot.lane.b32.xlu0 %v1319_v14, %s1164_s7 }
 0x177   :  { %465 = vrot.lane.b32.xlu1 %v1328_v17, %s1164_s7  ;;  %511 = vrot.lane.b32.xlu2 %v1319_v14, %s1163_s1 }
 0x178   :  { %432 = vrot.lane.b32.xlu0 %v1328_v17, %s1165_s8 }
 0x17f   :  { %428 = vrot.lane.b32.xlu1 %v1319_v14, %s1165_s8  ;;  %515 = vrot.lane.b32.xlu2 %v1328_v17, %s1163_s1 }
 0x180   :  { %424 = vrot.lane.b32.xlu0 %v1337_v21, %s1165_s8 }
 0x181   :  { %v510_v24 = vpop.permute.xlu2 %509 }
 0x187   :  { %395 = vrot.lane.b32.xlu1 %v1319_v14, %s1167_s10  ;;  %507 = vrot.lane.b32.xlu2 %v1337_v21, %s1163_s1 }
 0x188   :  { %469 = vrot.lane.b32.xlu0 %v1348_v26, %s1164_s7 }
 0x189   :  { %v514_v27 = vpop.permute.xlu2 %513 }
 0x18a   :  { %v1359_v28 = vsel %vm521_vm7, %v510_v24, %v514_v27 }
 0x18f   :  { %345 = vrot.lane.b32.xlu1 %v1319_v14, %s1166_s9  ;;  %457 = vrot.lane.b32.xlu2 %v1337_v21, %s1164_s7 }
 0x190   :  { %312 = vrot.lane.b32.xlu0 %v1319_v14, %s1162_s29 }
 0x191   :  { %v460_v29 = vpop.permute.xlu2 %459 }
 0x197   :  { %403 = vrot.lane.b32.xlu1 %v1348_v26, %s1167_s10  ;;  %391 = vrot.lane.b32.xlu2 %v1337_v21, %s1167_s10 }
 0x198   :  { %247 = vrot.lane.b32.xlu0 %v1337_v21, %s1169_s12 }
 0x199   :  { %v1374_v30 = vpop.permute.xlu2 %430  ;;  %v506_v31 = vpop.permute.xlu1 %505 }
 0x19a   :  { %v1378_v32 = vsel %vm521_vm7, %v506_v31, %v510_v24  ;;  %v464_v33 = vpop.permute.xlu0 %463 }
 0x19b   :  { %v1382_v34 = vsel %vm471_vm8, %v460_v29, %v464_v33 }
 0x19f   :  { %308 = vrot.lane.b32.xlu1 %v1337_v21, %s1162_s29  ;;  %341 = vrot.lane.b32.xlu2 %v1337_v21, %s1166_s9 }
 0x1a0   :  { %436 = vrot.lane.b32.xlu0 %v1348_v26, %s1165_s8 }
 0x1a1   :  { %v394_v35 = vpop.permute.xlu2 %393  ;;  %v456_v36 = vpop.permute.xlu1 %455 }
 0x1a2   :  { %v1393_v37 = vsel %vm471_vm8, %v456_v36, %v460_v29  ;;  %v427_v38 = vpop.permute.xlu0 %426 }
 0x1a3   :  { %v1398_v39 = vsel %vm438_vm9, %v427_v38, %v1374_v30 }
 0x1a7   :  { %548 = vrot.lane.b32.xlu1 %v1328_v17, %s1168_s11  ;;  %519 = vrot.lane.b32.xlu2 %v1348_v26, %s1163_s1 }
 0x1a8   :  { %540 = vrot.lane.b32.xlu0 %v1337_v21, %s1168_s11 }
 0x1a9   :  { %v518_v43 = vpop.permute.xlu2 %517  ;;  %v340_v44 = vpop.permute.xlu1 %339 }
 0x1aa   :  { %v522_v45 = vsel %vm521_vm7, %v514_v27, %v518_v43  ;;  %v528_v46 = vsel %vm521_vm7, %v518_v43, %v506_v31  ;;  %v423_v47 = vpop.permute.xlu0 %422 }
 0x1ab   :  { %v1422_v48 = vmul.f32 %v522_v45, %v1410_v41  ;;  %v1425_v49 = vmul.f32 %v528_v46, %v1413_v42  ;;  %v1429_v50 = vsel %vm438_vm9, %v423_v47, %v427_v38 }
 0x1af   :  { %399 = vrot.lane.b32.xlu1 %v1328_v17, %s1167_s10  ;;  %353 = vrot.lane.b32.xlu2 %v1348_v26, %s1166_s9 }
 0x1b0   :  { %349 = vrot.lane.b32.xlu0 %v1328_v17, %s1166_s9 }
 0x1b1   :  { %v352_v51 = vpop.permute.xlu2 %351  ;;  %v402_v52 = vpop.permute.xlu1 %401 }
 0x1b2   :  { %v1441_v53 = vsel %vm355_vm10, %v352_v51, %v340_v44  ;;  %v390_v57 = vpop.permute.xlu0 %389 }
 0x1b3   :  { %v1445_v58 = vsel %vm405_vm11, %v390_v57, %v394_v35  ;;  %v1449_v59 = vsel %vm405_vm11, %v402_v52, %v390_v57 }
 0x1b7   :  { %316 = vrot.lane.b32.xlu1 %v1328_v17, %s1162_s29  ;;  %544 = vrot.lane.b32.xlu2 %v1319_v14, %s1168_s11 }
 0x1b8   :  { %552 = vrot.lane.b32.xlu0 %v1348_v26, %s1168_s11 }
 0x1b9   :  { %v246_v60 = vpop.permute.xlu2 %245  ;;  %v1457_v61 = vpop.permute.xlu1 %306 }
 0x1ba   :  { %v344_v63 = vpop.permute.xlu0 %343 }
 0x1bb   :  { %v1461_v0 = vsel %vm355_vm10, %v340_v44, %v344_v63 }
 0x1bf   :  { %253 = vrot.lane.b32.xlu1 %v1259_v56, %s1169_s12  ;;  %251 = vrot.lane.b32.xlu2 %v1319_v14, %s1169_s12 }
 0x1c0   :  { %255 = vrot.lane.b32.xlu0 %v1328_v17, %s1169_s12 }
 0x1c1   :  { %v1470_v1 = vpop.permute.xlu2 %257  ;;  %v543_v4 = vpop.permute.xlu1 %542 }
 0x1c2   :  { %v1480_v6 = vsel %vm263_vm12, %v1470_v1, %v246_v60  ;;  %v468_v7 = vpop.permute.xlu0 %467 }
 0x1c3   :  { %v472_v9 = vsel %vm471_vm8, %v464_v33, %v468_v7  ;;  %v478_v10 = vsel %vm471_vm8, %v468_v7, %v456_v36  ;;  %v1538_v36 = vperm.slane %v1403_v40, 1 }
 0x1c4   :  { %v1490_v11 = vmul.f32 %v1410_v41, %v472_v9  ;;  %v492_v12 = vmul.f32 %v1413_v42, %v478_v10 }
 0x1c6   :  { %v1494_v13 = vmul.f32 %v492_v12, %v1483_v8 }
 0x1c7   :  { %320 = vrot.lane.b32.xlu2 %v1348_v26, %s1162_s29 }
 0x1c9   :  { %v398_v15 = vpop.permute.xlu2 %397  ;;  %v1498_v16 = vpop.permute.xlu1 %249 }
 0x1ca   :  { %v406_v18 = vsel %vm405_vm11, %v398_v15, %v402_v52  ;;  %v1504_v20 = vsel %vm405_vm11, %v394_v35, %v398_v15  ;;  %v1509_v22 = vsel %vm263_vm12, %v246_v60, %v1498_v16  ;;  %v1511_v23 = vpop.permute.xlu0 %310  ;;  %v1560_v52 = vld [vmem:[%s1967_s4] ss:$4 sm:$0xf]  ;;  %v1568_v60 = vperm.slane %v1403_v40, 0 }
 0x1cb   :  { %v1514_v24 = vmul.f32 %v406_v18, %v1483_v8  ;;  %v1565_v57 = vperm.slane %v1560_v52, 3 }
 0x1cc   :  { %v530_v18 = vmul.f32 %v1378_v32, %v1568_v60  ;;  %v490_v32 = vmul.f32 %v1538_v36, %v1382_v34 }
 0x1cd   :  { %1979 = vst [vmem:[#allocation15_spill] sm:$0xff] %v1514_v24 }
 0x1cf   :  { %259 = vrot.lane.b32.xlu2 %v1348_v26, %s1169_s12 }
 0x1d1   :  { %v435_v19 = vpop.permute.xlu1 %434  ;;  %v512_v27 = vpop.permute.xlu2 %511 }
 0x1d2   :  { %v1522_v29 = vsel %vm438_vm9, %v1374_v30, %v435_v19  ;;  %v1526_v31 = vsel %vm438_vm9, %v435_v19, %v423_v47  ;;  %v1528_v33 = vpop.permute.xlu0 %546  ;;  %v531_v47 = vmul.f32 %v1359_v28, %v1538_v36 }
 0x1d3   :  { %v1533_v35 = vsel %vm554_vm13, %v543_v4, %v1528_v33 }
 0x1d7   :  { %550 = vrot.lane.b32.xlu2 %v1280_v62, %s1168_s11 }
 0x1d9   :  { %v1540_v38 = vpop.permute.xlu1 %318  ;;  %v1542_v30 = vpop.permute.xlu2 %515 }
 0x1da   :  { %v525_v43 = vsel %vm521_vm7, %v512_v27, %v1542_v30  ;;  %v1547_v44 = vpop.permute.xlu0 %538 }
 0x1db   :  { %v1552_v45 = vsel %vm554_vm13, %v1547_v44, %v543_v4  ;;  %v535_v46 = vmul.f32 %v525_v43, %v1538_v36 }
 0x1dd   :  { %636 = vmatpush.msrb.mxu2 %v535_v46  ;;  %v1597_v46 = vperm.slane %v1475_v5, 0 }
 0x1df   :  { %637 = vmatpush.msrb.mxu2 %v531_v47  ;;  %314 = vrot.lane.b32.xlu2 %v1259_v56, %s1162_s29  ;;  %v1600_v47 = vperm.slane %v1475_v5, 1 }
 0x1e1   :  { %v348_v4 = vpop.permute.xlu1 %347  ;;  %v1570_v7 = vpop.permute.xlu2 %507 }
 0x1e2   :  { %v356_v28 = vsel %vm355_vm10, %v348_v4, %v352_v51  ;;  %v1576_v9 = vsel %vm355_vm10, %v344_v63, %v348_v4  ;;  %v527_v10 = vsel %vm521_vm7, %v1570_v7, %v512_v27  ;;  %v462_v12 = vpop.permute.xlu0 %461  ;;  %v489_v4 = vmul.f32 %v1568_v60, %v1393_v37 }
 0x1e3   :  { %v1582_v15 = vmul.f32 %v356_v28, %v1565_v57  ;;  %v534_v40 = vmul.f32 %v527_v10, %v1568_v60 }
 0x1e4   :  { %v497_v34 = vmul.f32 %v489_v4, %v1597_v46 }
 0x1e5   :  { %1980 = vst [vmem:[#allocation16_spill] sm:$0xff] %v1582_v15  ;;  %590 = vmatpush.msrb.mxu0 %v534_v40  ;;  %v498_v15 = vmul.f32 %v490_v32, %v1600_v47 }
 0x1e7   :  { %591 = vmatpush.msrb.mxu0 %v530_v18  ;;  %v1613_v18 = vld [vmem:[%s1967_s4 + $0x3] ss:$4 sm:$0xf] }
 0x1e9   :  { %v1587_v51 = vpop.permute.xlu1 %465  ;;  %v458_v19 = vpop.permute.xlu2 %457 }
 0x1ea   :  { %v475_v63 = vsel %vm471_vm8, %v462_v12, %v1587_v51  ;;  %v477_v27 = vsel %vm471_vm8, %v458_v19, %v462_v12  ;;  %v1594_v43 = vpop.permute.xlu0 %432 }
 0x1eb   :  { %v494_v28 = vmul.f32 %v1538_v36, %v475_v63  ;;  %v493_v10 = vmul.f32 %v1568_v60, %v477_v27  ;;  %v1618_v63 = vperm.slane %v1613_v18, 1 }
 0x1ed   :  { %v501_v12 = vmul.f32 %v493_v10, %v1597_v46  ;;  %v502_v40 = vmul.f32 %v494_v28, %v1600_v47  ;;  %v1626_v10 = vperm.slane %v1613_v18, 0 }
 0x1ef   :  { %592 = vmatpush.msrb.mxu0 %v501_v12  ;;  %638 = vmatpush.msrb.mxu2 %v502_v40  ;;  %v448_v12 = vmul.f32 %v1398_v39, %v1618_v63  ;;  %v447_v40 = vmul.f32 %v1429_v50, %v1626_v10 }
 0x1f1   :  { %v429_v37 = vpop.permute.xlu1 %428  ;;  %v392_v24 = vpop.permute.xlu2 %391  ;;  %593 = vmatpush.msrb.mxu0 %v497_v34  ;;  %639 = vmatpush.msrb.mxu2 %v498_v15 }
 0x1f2   :  { %v442_v27 = vsel %vm438_vm9, %v429_v37, %v1594_v43  ;;  %v1623_v28 = vpop.permute.xlu0 %424 }
 0x1f3   :  { %v444_v32 = vsel %vm438_vm9, %v1623_v28, %v429_v37  ;;  %v452_v4 = vmul.f32 %v442_v27, %v1618_v63 }
 0x1f4   :  { %v451_v15 = vmul.f32 %v444_v32, %v1626_v10 }
 0x1f5   :  { %640 = vmatpush.msrb.mxu2 %v452_v4  ;;  %v274_v4 = vperm.slane %v1560_v52, 1 }
 0x1f6   :  { %594 = vmatpush.msrb.mxu0 %v451_v15 }
 0x1f7   :  { %641 = vmatpush.msrb.mxu2 %v448_v12 }
 0x1f8   :  { %595 = vmatpush.msrb.mxu0 %v447_v40  ;;  %v365_v40 = vmul.f32 %v1461_v0, %v274_v4 }
 0x1f9   :  { %v1637_v34 = vpop.permute.xlu1 %395  ;;  %v342_v62 = vpop.permute.xlu2 %341  ;;  %642 = vmatpush.msrb.mxu2 %v1319_v14  ;;  %v415_v14 = vmul.f32 %v1445_v58, %v1600_v47 }
 0x1fa   :  { %v411_v37 = vsel %vm405_vm11, %v392_v24, %v1637_v34  ;;  %596 = vmatpush.msrb.mxu0 %v1337_v21  ;;  %v1644_v27 = vpop.permute.xlu0 %469 }
 0x1fb   :  { %v479_v39 = vsel %vm471_vm8, %v1644_v27, %v458_v19  ;;  %643 = vmatpush.msrb.mxu2 %v1257_v55  ;;  %v419_v50 = vmul.f32 %v411_v37, %v1600_v47 }
 0x1fc   :  { %v496_v32 = vmul.f32 %v1413_v42, %v479_v39  ;;  %597 = vmatpush.msrb.mxu0 %v1255_v54 }
 0x1fd   :  { %644 = vmatpush.msrb.mxu2 %v419_v50 }
 0x1fe   :  { %v1656_v21 = vmul.f32 %v496_v32, %v1483_v8 }
 0x1ff   :  { %645 = vmatpush.msrb.mxu2 %v415_v14  ;;  %v1682_v14 = vperm.slane %v1560_v52, 0 }
 0x201   :  { %v1659_v15 = vpop.permute.xlu1 %345  ;;  %v520_v19 = vpop.permute.xlu2 %519 }
 0x202   :  { %v361_v55 = vsel %vm355_vm10, %v342_v62, %v1659_v15  ;;  %v523_v54 = vsel %vm521_vm7, %v1542_v30, %v520_v19  ;;  %v529_v58 = vsel %vm521_vm7, %v520_v19, %v1570_v7  ;;  %v1670_v12 = vpop.permute.xlu0 %312  ;;  %v382_v30 = vmul.f32 %v1618_v63, %v365_v40 }
 0x203   :  { %v369_v37 = vmul.f32 %v361_v55, %v274_v4  ;;  %v1674_v39 = vmul.f32 %v523_v54, %v1410_v41  ;;  %v1677_v50 = vmul.f32 %v529_v58, %v1413_v42 }
 0x205   :  { %v386_v32 = vmul.f32 %v1618_v63, %v369_v37  ;;  %v364_v37 = vmul.f32 %v1441_v53, %v1682_v14 }
 0x207   :  { %646 = vmatpush.msrb.mxu2 %v386_v32  ;;  %v414_v32 = vmul.f32 %v1449_v59, %v1597_v46  ;;  %v381_v26 = vmul.f32 %v1626_v10, %v364_v37  ;;  %v282_v37 = vmul.f32 %v274_v4, %v1509_v22  ;;  %v563_v22 = vmul.f32 %v1552_v45, %v1568_v60  ;;  %v1740_v45 = vld [vmem:[#allocation5 + $0x8] sm:$0xff] }
 0x209   :  { %v1684_v7 = vpop.permute.xlu1 %403  ;;  %v1686_v19 = vpop.permute.xlu2 %353  ;;  %647 = vmatpush.msrb.mxu2 %v382_v30 }
 0x20a   :  { %1981 = vst [vmem:[#allocation17_spill] sm:$0xff] %v1684_v7  ;;  %v413_v0 = vsel %vm405_vm11, %v1684_v7, %v392_v24  ;;  %v363_v55 = vsel %vm355_vm10, %v1686_v19, %v342_v62  ;;  %v1694_v54 = vpop.permute.xlu0 %247 }
 0x20b   :  { %1982 = vst [vmem:[#allocation18_spill] sm:$0xff] %v1686_v19  ;;  %v368_v58 = vmul.f32 %v363_v55, %v1682_v14  ;;  %v418_v40 = vmul.f32 %v413_v0, %v1597_v46  ;;  %v327_v0 = vsel %vm322_vm14, %v1457_v61, %v1511_v23 }
 0x20d   :  { %598 = vmatpush.msrb.mxu0 %v418_v40  ;;  %v385_v24 = vmul.f32 %v1626_v10, %v368_v58  ;;  %v332_v58 = vmul.f32 %v327_v0, %v274_v4 }
 0x20f   :  { %599 = vmatpush.msrb.mxu0 %v414_v32 }
 0x211   :  { %v309_v30 = vpop.permute.xlu1 %308  ;;  %v545_v62 = vpop.permute.xlu2 %544  ;;  %600 = vmatpush.msrb.mxu0 %v385_v24 }
 0x212   :  { %v328_v53 = vsel %vm322_vm14, %v309_v30, %v1670_v12  ;;  %v1712_v59 = vpop.permute.xlu0 %436 }
 0x213   :  { %601 = vmatpush.msrb.mxu0 %v381_v26  ;;  %v336_v55 = vmul.f32 %v328_v53, %v274_v4  ;;  %v564_v26 = vmul.f32 %v1533_v35, %v1538_v36  ;;  %v473_v35 = vsel %vm471_vm8, %v1587_v51, %v1644_v27 }
 0x215   :  { %648 = vmatpush.msrb.mxu2 %v336_v55 }
 0x217   :  { %649 = vmatpush.msrb.mxu2 %v332_v58 }
 0x219   :  { %v549_v40 = vpop.permute.xlu1 %548  ;;  %v1714_v32 = vpop.permute.xlu2 %251 }
 0x21a   :  { %v558_v24 = vsel %vm554_vm13, %v545_v62, %v549_v40  ;;  %v269_v19 = vsel %vm263_vm12, %v1694_v54, %v1714_v32  ;;  %v541_v7 = vpop.permute.xlu0 %540 }
 0x21b   :  { %v568_v0 = vmul.f32 %v558_v24, %v1538_v36  ;;  %v286_v53 = vmul.f32 %v274_v4, %v269_v19  ;;  %v560_v55 = vsel %vm554_vm13, %v541_v7, %v545_v62  ;;  %v299_v4 = vmul.f32 %v1600_v47, %v282_v37  ;;  %v1781_v37 = vld [vmem:[#allocation5 + $0x18] sm:$0xff] }
 0x21c   :  { %v567_v58 = vmul.f32 %v560_v55, %v1568_v60  ;;  %v572_v19 = vmul.f32 %v564_v26, %v1618_v63  ;;  %v571_v60 = vmul.f32 %v563_v22, %v1626_v10  ;;  %v495_v62 = vmul.f32 %v1410_v41, %v473_v35 }
 0x21d   :  { %v303_v2 = vmul.f32 %v1600_v47, %v286_v53  ;;  %v576_v3 = vmul.f32 %v568_v0, %v1618_v63  ;;  %v1758_v47 = vperm.slane %v1475_v5, 2  ;;  %v329_v63 = vsel %vm322_vm14, %v1540_v38, %v1457_v61 }
 0x21e   :  { %v575_v36 = vmul.f32 %v567_v58, %v1626_v10  ;;  %v440_v5 = vsel %vm438_vm9, %v1594_v43, %v1712_v59  ;;  %v331_v61 = vmul.f32 %v329_v63, %v1682_v14  ;;  %v1786_v43 = vld [vmem:[#allocation5 + $0x10] sm:$0xff] }
 0x21f   :  { %650 = vmatpush.msrb.mxu2 %v303_v2  ;;  %673 = vmatpush.msrb.mxu3 %v576_v3  ;;  %v1748_v2 = vld [vmem:[#allocation5] sm:$0xff]  ;;  %v503_v27 = vmul.f32 %v495_v62, %v1758_v47 }
 0x220   :  { %627 = vmatpush.msrb.mxu1 %v575_v36  ;;  %v281_v36 = vmul.f32 %v1682_v14, %v1480_v6 }
 0x221   :  { %v1744_v24 = vpop.permute.xlu1 %399  ;;  %v1746_v0 = vpop.permute.xlu2 %320  ;;  %651 = vmatpush.msrb.mxu2 %v299_v4  ;;  %674 = vmatpush.msrb.mxu3 %v572_v19 }
 0x222   :  { %v330_v3 = vsel %vm322_vm14, %v1746_v0, %v309_v30  ;;  %628 = vmatpush.msrb.mxu1 %v571_v60  ;;  %v1753_v51 = vpop.permute.xlu0 %349  ;;  %1045 = vmatmul.msk.f32.vlgmr.msrb.gmra.mxu3 %vm583_vm15, %v1740_v45  ;;  %v499_v30 = vmul.f32 %v1490_v11, %v1758_v47  ;;  %v409_v6 = vsel %vm405_vm11, %v1637_v34, %v1744_v24 }
 0x223   :  { %v335_v10 = vmul.f32 %v330_v3, %v1682_v14  ;;  %1043 = vmatmul.msk.f32.vlgmr.msrb.gmra.mxu1 %vm583_vm15, %v1740_v45  ;;  %652 = vmatmul.f32.vlgmr.msrb.gmra.mxu2 %v1748_v2  ;;  %v298_v62 = vmul.f32 %v1597_v46, %v281_v36  ;;  %v420_v3 = vmul.f32 %v409_v6, %v1758_v47  ;;  %v1990_v6 = vld [vmem:[#allocation16_spill] sm:$0xff] }
 0x224   :  { %682 = vmatpush.msra.mxu1 %v1674_v39  ;;  %v1777_v39 = vperm.slane %v1613_v18, 2 }
 0x225   :  { %602 = vmatpush.msrb.mxu0 %v335_v10  ;;  %v416_v10 = vmul.f32 %v1504_v20, %v1758_v47 }
 0x226   :  { %683 = vmatpush.msra.mxu1 %v1422_v48  ;;  %v453_v48 = vmul.f32 %v440_v5, %v1777_v39  ;;  %v449_v11 = vmul.f32 %v1522_v29, %v1777_v39  ;;  %v1807_v29 = vperm.slane %v1613_v18, 3  ;;  %v275_v18 = vperm.slane %v1560_v52, 2 }
 0x227   :  { %603 = vmatpush.msrb.mxu0 %v331_v61 }
 0x228   :  { %684 = vmatpush.msra.mxu1 %v503_v27 }
 0x229   :  { %v1784_v26 = vpop.permute.xlu1 %316  ;;  %v260_v53 = vpop.permute.xlu2 %259 }
 0x22a   :  { %685 = vmatpush.msra.mxu1 %v499_v30  ;;  %v271_v55 = vsel %vm263_vm12, %v260_v53, %v1694_v54  ;;  %v553_v22 = vpop.permute.xlu0 %552  ;;  %1046 = vmatmul.msk.f32.gmra.mxu3 %vm583_vm15, %v1781_v37 }
 0x22b   :  { %v285_v58 = vmul.f32 %v1682_v14, %v271_v55  ;;  %v556_v35 = vsel %vm554_vm13, %v549_v40, %v553_v22  ;;  %v562_v4 = vsel %vm554_vm13, %v553_v22, %v541_v7  ;;  %1044 = vmatmul.msk.f32.gmra.mxu1 %vm583_vm15, %v1781_v37  ;;  %655 = vmatmul.f32.gmra.mxu2 %v1786_v43 }
 0x22c   :  { %686 = vmatpush.msra.mxu1 %v453_v48  ;;  %v569_v54 = vmul.f32 %v556_v35, %v1410_v41  ;;  %v570_v19 = vmul.f32 %v562_v4, %v1413_v42  ;;  %v359_v14 = vsel %vm355_vm10, %v1659_v15, %v1753_v51  ;;  %v446_v48 = vsel %vm438_vm9, %v1712_v59, %v1623_v28  ;;  %v1986_v35 = vld [vmem:[#allocation18_spill] sm:$0xff] }
 0x22d   :  { %v302_v40 = vmul.f32 %v1597_v46, %v285_v58  ;;  %v370_v34 = vmul.f32 %v359_v14, %v275_v18  ;;  %v454_v28 = vmul.f32 %v446_v48, %v1807_v29  ;;  %v1984_v58 = vld [vmem:[#allocation11_spill] sm:$0xff]  ;;  %v357_v36 = vsel %vm355_vm10, %v1753_v51, %v1986_v35  ;;  %v1987_v4 = vld [vmem:[#allocation14_spill] sm:$0xff] }
 0x22e   :  { %687 = vmatpush.msra.mxu1 %v449_v11  ;;  %v577_v7 = vmul.f32 %v569_v54, %v1777_v39  ;;  %v578_v60 = vmul.f32 %v570_v19, %v1807_v29  ;;  %v1983_v11 = vld [vmem:[#allocation12_spill] sm:$0xff]  ;;  %v371_v19 = vmul.f32 %v357_v36, %v1565_v57  ;;  %v1989_v51 = vld [vmem:[#allocation15_spill] sm:$0xff]  ;;  %v384_v14 = vmul.f32 %v1807_v29, %v1990_v6 }
 0x22f   :  { %604 = vmatpush.msrb.mxu0 %v302_v40  ;;  %v1988_v40 = vld [vmem:[#allocation13_spill] sm:$0xff]  ;;  %vm1001_vm10 = vcmask 1043456  }
 0x230   :  { %688 = vmatpush.msra.mxu1 %v1328_v17  ;;  %719 = vmatpush.msra.mxu3 %v577_v7 }
 0x231   :  { %765 = vmatpush.msra.mxu2 %v578_v60  ;;  %v254_v63 = vpop.permute.xlu1 %253  ;;  %v551_v15 = vpop.permute.xlu2 %550  ;;  %605 = vmatpush.msrb.mxu0 %v298_v62 }
 0x232   :  { %689 = vmatpush.msra.mxu1 %v1259_v56  ;;  %v264_v52 = vsel %vm263_vm12, %v254_v63, %v1470_v1  ;;  %v555_v17 = vsel %vm554_vm13, %v1528_v33, %v551_v15  ;;  %v561_v46 = vsel %vm554_vm13, %v551_v15, %v1547_v44  ;;  %v256_v27 = vpop.permute.xlu0 %255  ;;  %v366_v56 = vmul.f32 %v1576_v9, %v275_v18 }
 0x233   :  { %v284_v5 = vmul.f32 %v1565_v57, %v264_v52  ;;  %v565_v20 = vmul.f32 %v555_v17, %v1410_v41  ;;  %v566_v61 = vmul.f32 %v561_v46, %v1413_v42  ;;  %v265_v1 = vsel %vm263_vm12, %v256_v27, %v260_v53  ;;  %728 = vmatpush.msra.mxu0 %v1677_v50 }
 0x234   :  { %690 = vmatpush.msra.mxu1 %v420_v3  ;;  %v288_v33 = vmul.f32 %v1565_v57, %v265_v1  ;;  %v387_v44 = vmul.f32 %v1777_v39, %v370_v34  ;;  %v326_v41 = vsel %vm322_vm14, %v1670_v12, %v1784_v26  ;;  %v267_v42 = vsel %vm263_vm12, %v1714_v32, %v256_v27 }
 0x235   :  { %v573_v30 = vmul.f32 %v565_v20, %v1777_v39  ;;  %v574_v9 = vmul.f32 %v566_v61, %v1807_v29  ;;  %729 = vmatpush.msra.mxu0 %v1425_v49  ;;  %v301_v50 = vmul.f32 %v1483_v8, %v284_v5  ;;  %v383_v53 = vmul.f32 %v1777_v39, %v366_v56 }
 0x236   :  { %691 = vmatpush.msra.mxu1 %v416_v10  ;;  %v305_v55 = vmul.f32 %v1483_v8, %v288_v33  ;;  %v266_v12 = vsel %vm263_vm12, %v1498_v16, %v254_v63  ;;  %v337_v49 = vmul.f32 %v326_v41, %v275_v18  ;;  %v287_v32 = vmul.f32 %v275_v18, %v267_v42 }
 0x237   :  { %720 = vmatpush.msra.mxu3 %v573_v30  ;;  %730 = vmatpush.msra.mxu0 %v1656_v21  ;;  %v283_v16 = vmul.f32 %v275_v18, %v266_v12  ;;  %v450_v39 = vmul.f32 %v1526_v31, %v1807_v29 }
 0x238   :  { %692 = vmatpush.msra.mxu1 %v387_v44  ;;  %766 = vmatpush.msra.mxu2 %v574_v9 }
 0x239   :  { %v315_v22 = vpop.permute.xlu2 %314  ;;  %1047 = vmatmul.msk.f32.vlgmr.msra.gmra.mxu3 %vm583_vm15, %v1740_v45  ;;  %731 = vmatpush.msra.mxu0 %v1494_v13  ;;  %v304_v13 = vmul.f32 %v1758_v47, %v287_v32  ;;  %v300_v31 = vmul.f32 %v1758_v47, %v283_v16  ;;  %v388_v47 = vmul.f32 %v1807_v29, %v371_v19 }
 0x23a   :  { %693 = vmatpush.msra.mxu1 %v383_v53  ;;  %v325_v59 = vsel %vm322_vm14, %v1511_v23, %v315_v22  ;;  %1049 = vmatmul.msk.f32.vlgmr.msra.gmra.mxu2 %vm583_vm15, %v1740_v45  ;;  %v1985_v23 = vld [vmem:[#allocation17_spill] sm:$0xff] }
 0x23b   :  { %v333_v21 = vmul.f32 %v325_v59, %v275_v18  ;;  %606 = vmatmul.f32.vlgmr.msrb.gmra.mxu0 %v1748_v2  ;;  %874 = vmatpush.msrb.mxu3 %v1983_v11  ;;  %v407_v45 = vsel %vm405_vm11, %v1744_v24, %v1985_v23  ;;  %v1079_v24 = vld [vmem:[#allocation2 + $0x10] sm:$0xff] }
 0x23c   :  { %694 = vmatpush.msra.mxu1 %v337_v49  ;;  %732 = vmatpush.msra.mxu0 %v454_v28  ;;  %v421_v54 = vmul.f32 %v407_v45, %v1483_v8  ;;  %v324_v8 = vsel %vm322_vm14, %v1784_v26, %v1746_v0 }
 0x23d   :  { %934 = vmatpush.msrb.mxu2 %v1984_v58  ;;  %v338_v7 = vmul.f32 %v324_v8, %v1565_v57 }
 0x23e   :  { %695 = vmatpush.msra.mxu1 %v333_v21  ;;  %733 = vmatpush.msra.mxu0 %v450_v39 }
 0x240   :  { %696 = vmatpush.msra.mxu1 %v304_v13  ;;  %734 = vmatpush.msra.mxu0 %v1987_v4 }
 0x241   :  { %1048 = vmatmul.msk.f32.gmra.mxu3 %vm583_vm15, %v1781_v37 }
 0x242   :  { %697 = vmatpush.msra.mxu1 %v300_v31  ;;  %735 = vmatpush.msra.mxu0 %v1988_v40 }
 0x243   :  { %698 = vmatmul.f32.vlgmr.msra.gmra.mxu1 %v1748_v2  ;;  %609 = vmatmul.f32.gmra.mxu0 %v1786_v43 }
 0x244   :  { %1050 = vmatmul.msk.f32.gmra.mxu2 %vm583_vm15, %v1781_v37  ;;  %736 = vmatpush.msra.mxu0 %v421_v54  ;;  %v323_v37 = vsel %vm322_vm14, %v315_v22, %v1540_v38 }
 0x245   :  { %914 = vmatpush.msrb.mxu1 %v1079_v24  ;;  %v334_v18 = vmul.f32 %v323_v37, %v1565_v57 }
 0x246   :  { %737 = vmatpush.msra.mxu0 %v1989_v51 }
 0x248   :  { %738 = vmatpush.msra.mxu0 %v388_v47 }
 0x24a   :  { %739 = vmatpush.msra.mxu0 %v384_v14 }
 0x24b   :  { %701 = vmatmul.f32.gmra.mxu1 %v1786_v43 }
 0x24c   :  { %740 = vmatpush.msra.mxu0 %v338_v7 }
 0x24e   :  { %741 = vmatpush.msra.mxu0 %v334_v18 }
 0x250   :  { %742 = vmatpush.msra.mxu0 %v305_v55 }
 0x252   :  { %743 = vmatpush.msra.mxu0 %v301_v50 }
 0x253   :  { %744 = vmatmul.f32.vlgmr.msra.gmra.mxu0 %v1748_v2 }
 0x25b   :  { %747 = vmatmul.f32.gmra.mxu0 %v1786_v43 }
 0x2a0   :  { %v630_v26 = vpop.f32.mrf.mxu1 }
 0x2a5   :  { %v676_v0 = vpop.f32.mrf.mxu3 }
 0x2a6   :  { %v653_v29 = vpop.f32.mrf.mxu2 }
 0x2a7   :  { %v1919_v57 = vadd.f32 %v676_v0, %v653_v29 }
 0x2a8   :  { %v633_v38 = vpop.f32.mrf.mxu1 }
 0x2a9   :  { %v785_v53 = vmul.f32 %v1919_v57, %v1919_v57 }
 0x2ad   :  { %v679_v25 = vpop.f32.mrf.mxu3 }
 0x2ae   :  { %v656_v62 = vpop.f32.mrf.mxu2 }
 0x2af   :  { %v1927_v17 = vadd.f32 %v679_v25, %v656_v62 }
 0x2b1   :  { %v789_v1 = vmul.f32 %v1927_v17, %v1927_v17 }
 0x2b8   :  { %v607_v60 = vpop.f32.mrf.mxu0 }
 0x2b9   :  { %v1917_v15 = vadd.f32 %v630_v26, %v607_v60 }
 0x2bb   :  { %v774_v2 = vadd.f32 %v1919_v57, %v1917_v15  ;;  %v784_v48 = vmul.f32 %v1917_v15, %v1917_v15 }
 0x2bc   :  { %v722_v3 = vpop.f32.mrf.mxu3 }
 0x2bd   :  { %v768_v10 = vpop.f32.mrf.mxu2  ;;  %v792_v16 = vadd.f32 %v785_v53, %v784_v48 }
 0x2c0   :  { %v699_v34 = vpop.f32.mrf.mxu1  ;;  %v610_v63 = vpop.f32.mrf.mxu0 }
 0x2c1   :  { %v1923_v52 = vadd.f32 %v722_v3, %v699_v34  ;;  %v1925_v43 = vadd.f32 %v633_v38, %v610_v63 }
 0x2c3   :  { %v775_v20 = vadd.f32 %v774_v2, %v1923_v52  ;;  %v788_v61 = vmul.f32 %v1925_v43, %v1925_v43  ;;  %v779_v30 = vadd.f32 %v1927_v17, %v1925_v43  ;;  %v786_v28 = vmul.f32 %v1923_v52, %v1923_v52 }
 0x2c4   :  { %v725_v46 = vpop.f32.mrf.mxu3 }
 0x2c5   :  { %v797_v42 = vadd.f32 %v789_v1, %v788_v61  ;;  %v793_v39 = vadd.f32 %v792_v16, %v786_v28 }
 0x2c7   :  { %v771_v9 = vpop.f32.mrf.mxu2 }
 0x2c8   :  { %v702_v27 = vpop.f32.mrf.mxu1 }
 0x2c9   :  { %v726_v33 = vadd.f32 %v725_v46, %v702_v27 }
 0x2cb   :  { %v790_v41 = vmul.f32 %v726_v33, %v726_v33  ;;  %v780_v12 = vadd.f32 %v779_v30, %v726_v33 }
 0x2cd   :  { %v798_v22 = vadd.f32 %v797_v42, %v790_v41 }
 0x2d0   :  { %v745_v56 = vpop.f32.mrf.mxu0 }
 0x2d1   :  { %v1929_v5 = vadd.f32 %v768_v10, %v745_v56 }
 0x2d3   :  { %v776_v44 = vadd.f32 %v775_v20, %v1929_v5  ;;  %v787_v21 = vmul.f32 %v1929_v5, %v1929_v5 }
 0x2d5   :  { %777 = vadd.xlane.f32.xlu2 %v776_v44  ;;  %v794_v11 = vadd.f32 %v793_v39, %v787_v21 }
 0x2d8   :  { %v748_v50 = vpop.f32.mrf.mxu0 }
 0x2d9   :  { %v772_v55 = vadd.f32 %v771_v9, %v748_v50 }
 0x2db   :  { %v781_v49 = vadd.f32 %v780_v12, %v772_v55  ;;  %v791_v32 = vmul.f32 %v772_v55, %v772_v55 }
 0x2dd   :  { %782 = vadd.xlane.f32.xlu0 %v781_v49  ;;  %v799_v59 = vadd.f32 %v798_v22, %v791_v32 }
 0x2df   :  { %800 = vadd.xlane.f32.xlu1 %v799_v59 }
 0x2e5   :  { %795 = vadd.xlane.f32.xlu0 %v794_v11 }
 0x348   :  { %v778_v23 = vpop.xlane.xlu2 %777 }
 0x349   :  { %v802_v31 = vmul.f32 0.001953125, %v778_v23 }
 0x34b   :  { %v806_v40 = vmul.f32 %v802_v31, %v802_v31  ;;  %v810_v61 = vsub.f32 %v1917_v15, %v802_v31  ;;  %v813_v1 = vsub.f32 %v1929_v5, %v802_v31  ;;  %v811_v42 = vsub.f32 %v1919_v57, %v802_v31  ;;  %v856_v15 = vld [vmem:[%s1966_s3] sm:$0xff]  ;;  %s1170_s3 = smov [#allocation7]  }
 0x34c   :  { %s1016_s22 = sshll.u32 %s1170_s3, 4  ;;  %s1017_s22 = int_to_ptr.vmem [resolvable:$true] %s1016_s22 }
 0x350   :  { %v783_v13 = vpop.xlane.xlu0 %782 }
 0x351   :  { %v803_v58 = vmul.f32 0.001953125, %v783_v13 }
 0x352   :  { %v801_v45 = vpop.xlane.xlu1 %800 }
 0x353   :  { %v805_v35 = vmul.f32 0.001953125, %v801_v45  ;;  %v807_v36 = vmul.f32 %v803_v58, %v803_v58  ;;  %v814_v25 = vsub.f32 %v1925_v43, %v803_v58  ;;  %v816_v38 = vsub.f32 %v726_v33, %v803_v58 }
 0x354   :  { %v817_v60 = vsub.f32 %v772_v55, %v803_v58  ;;  %v812_v43 = vsub.f32 %v1923_v52, %v802_v31  ;;  %v815_v41 = vsub.f32 %v1927_v17, %v803_v58  ;;  %v1080_v55 = vld [vmem:[#allocation2 + $0x8] sm:$0xff] }
 0x355   :  { %v809_v4 = vsub.f32 %v805_v35, %v807_v36 }
 0x357   :  { %v819_v54 = vadd.f32 1e-05, %v809_v4 }
 0x358   :  { %v796_v19 = vpop.xlane.xlu0 %795 }
 0x359   :  { %1073 = vrsqrt.f32 %v819_v54  ;;  %v804_v24 = vmul.f32 0.001953125, %v796_v19  ;;  %vm836_vm1 = vweird.f32 %v819_v54 }
 0x35b   :  { %v808_v51 = vsub.f32 %v804_v24, %v806_v40 }
 0x35d   :  { %v818_v47 = vadd.f32 1e-05, %v808_v51 }
 0x35f   :  { %v1074_v8 = vpop.eup %1073  ;;  %1075 = vrsqrt.f32 %v818_v47  ;;  %vm826_vm4 = vweird.f32 %v818_v47 }
 0x360   :  { %v831_v6 = vmul.f32 %v1074_v8, %v819_v54  ;;  %vm837_vm0 = vweird.f32 %v1074_v8 }
 0x361   :  { %vm838_vm2 = vmor %vm836_vm1, %vm837_vm0 }
 0x362   :  { %v832_v14 = vmul.f32 %v1074_v8, %v831_v6 }
 0x364   :  { %v833_v37 = vmul.f32 0.5, %v832_v14 }
 0x365   :  { %v1076_v7 = vpop.eup %1075 }
 0x366   :  { %v834_v18 = vsub.f32 1.5, %v833_v37  ;;  %v821_v0 = vmul.f32 %v1076_v7, %v818_v47  ;;  %vm827_vm3 = vweird.f32 %v1076_v7 }
 0x367   :  { %vm828_vm5 = vmor %vm826_vm4, %vm827_vm3 }
 0x368   :  { %v835_v26 = vmul.f32 %v1074_v8, %v834_v18  ;;  %v822_v29 = vmul.f32 %v1076_v7, %v821_v0 }
 0x36a   :  { %v823_v62 = vmul.f32 0.5, %v822_v29  ;;  %v839_v3 = vsel %vm838_vm2, %v1074_v8, %v835_v26 }
 0x36b   :  { %v844_v34 = vmul.f32 %v839_v3, %v814_v25  ;;  %v846_v63 = vmul.f32 %v839_v3, %v816_v38  ;;  %v847_v10 = vmul.f32 %v839_v3, %v817_v60  ;;  %v845_v52 = vmul.f32 %v839_v3, %v815_v41 }
 0x36c   :  { %v824_v2 = vsub.f32 1.5, %v823_v62 }
 0x36d   :  { %v852_v46 = vmax.f32 %v844_v34, 0.0  ;;  %v854_v27 = vmax.f32 %v846_v63, 0.0  ;;  %v855_v56 = vmax.f32 %v847_v10, 0.0  ;;  %v853_v17 = vmax.f32 %v845_v52, 0.0 }
 0x36e   :  { %v825_v20 = vmul.f32 %v1076_v7, %v824_v2 }
 0x36f   :  { %875 = vmatpush.msrb.mxu3 %v852_v46  ;;  %915 = vmatpush.msrb.mxu1 %v854_v27 }
 0x370   :  { %935 = vmatpush.msrb.mxu2 %v855_v56  ;;  %v829_v33 = vsel %vm828_vm5, %v1076_v7, %v825_v20 }
 0x371   :  { %v840_v44 = vmul.f32 %v829_v33, %v810_v61  ;;  %v842_v30 = vmul.f32 %v829_v33, %v812_v43  ;;  %v843_v9 = vmul.f32 %v829_v33, %v813_v1  ;;  %v841_v5 = vmul.f32 %v829_v33, %v811_v42 }
 0x373   :  { %v848_v50 = vmax.f32 %v840_v44, 0.0  ;;  %v850_v48 = vmax.f32 %v842_v30, 0.0  ;;  %v851_v53 = vmax.f32 %v843_v9, 0.0  ;;  %v849_v57 = vmax.f32 %v841_v5, 0.0 }
 0x375   :  { %876 = vmatpush.msrb.mxu3 %v848_v50  ;;  %916 = vmatpush.msrb.mxu1 %v850_v48 }
 0x376   :  { %936 = vmatpush.msrb.mxu2 %v851_v53  ;;  %1051 = vmatmul.msk.f32.vlgmr.msrb.gmra.mxu3 %vm857_vm6, %v856_v15 }
 0x377   :  { %894 = vmatpush.msra.mxu3 %v1080_v55  ;;  %1054 = vmatmul.msk.f32.vlgmr.msrb.gmra.mxu2 %vm857_vm6, %v856_v15 }
 0x378   :  { %1053 = vmatmul.msk.f32.vlgmr.msrb.gmra.mxu1 %vm857_vm6, %v856_v15 }
 0x379   :  { %895 = vmatpush.msra.mxu3 %v853_v17 }
 0x37b   :  { %896 = vmatpush.msra.mxu3 %v849_v57 }
 0x37e   :  { %1052 = vmatmul.msk.f32.vlgmr.msra.gmra.mxu3 %vm857_vm6, %v856_v15 }
 0x3f5   :  { %v918_v49 = vpop.f32.mrf.mxu1 }
 0x3f6   :  { %v948_v21 = vmul.f32 %v918_v49, %v918_v49 }
 0x3f9   :  { %v878_v12 = vpop.f32.mrf.mxu3 }
 0x3fa   :  { %v938_v22 = vpop.f32.mrf.mxu2  ;;  %v946_v28 = vmul.f32 %v878_v12, %v878_v12 }
 0x3fb   :  { %v949_v13 = vmul.f32 %v938_v22, %v938_v22 }
 0x401   :  { %v898_v32 = vpop.f32.mrf.mxu3 }
 0x402   :  { %v941_v59 = vadd.f32 %v898_v32, %v878_v12  ;;  %v947_v16 = vmul.f32 %v898_v32, %v898_v32 }
 0x404   :  { %v950_v39 = vadd.f32 %v947_v16, %v946_v28  ;;  %v942_v11 = vadd.f32 %v941_v59, %v918_v49 }
 0x406   :  { %v943_v58 = vadd.f32 %v942_v11, %v938_v22  ;;  %v951_v23 = vadd.f32 %v950_v39, %v948_v21 }
 0x408   :  { %944 = vadd.xlane.f32.xlu2 %v943_v58  ;;  %v952_v45 = vadd.f32 %v951_v23, %v949_v13 }
 0x40a   :  { %953 = vadd.xlane.f32.xlu1 %v952_v45 }
 0x47b   :  { %v945_v35 = vpop.xlane.xlu2 %944 }
 0x47c   :  { %v955_v36 = vmul.f32 0.001953125, %v945_v35 }
 0x47d   :  { %v954_v31 = vpop.xlane.xlu1 %953 }
 0x47e   :  { %v956_v4 = vmul.f32 0.001953125, %v954_v31  ;;  %v957_v54 = vmul.f32 %v955_v36, %v955_v36  ;;  %v959_v37 = vsub.f32 %v878_v12, %v955_v36  ;;  %v960_v7 = vsub.f32 %v898_v32, %v955_v36 }
 0x47f   :  { %v961_v18 = vsub.f32 %v918_v49, %v955_v36  ;;  %v962_v0 = vsub.f32 %v938_v22, %v955_v36 }
 0x480   :  { %v958_v19 = vsub.f32 %v956_v4, %v957_v54 }
 0x482   :  { %v963_v40 = vadd.f32 1e-05, %v958_v19 }
 0x484   :  { %1077 = vrsqrt.f32 %v963_v40  ;;  %vm970_vm8 = vweird.f32 %v963_v40 }
 0x48a   :  { %v1078_v24 = vpop.eup %1077 }
 0x48b   :  { %v965_v51 = vmul.f32 %v1078_v24, %v963_v40  ;;  %vm971_vm7 = vweird.f32 %v1078_v24 }
 0x48c   :  { %vm972_vm9 = vmor %vm970_vm8, %vm971_vm7 }
 0x48d   :  { %v966_v47 = vmul.f32 %v1078_v24, %v965_v51 }
 0x48f   :  { %v967_v8 = vmul.f32 0.5, %v966_v47 }
 0x491   :  { %v968_v6 = vsub.f32 1.5, %v967_v8 }
 0x493   :  { %v969_v14 = vmul.f32 %v1078_v24, %v968_v6 }
 0x495   :  { %v973_v26 = vsel %vm972_vm9, %v1078_v24, %v969_v14 }
 0x496   :  { %v974_v29 = vmul.f32 %v973_v26, %v959_v37  ;;  %v975_v25 = vmul.f32 %v973_v26, %v960_v7  ;;  %v976_v38 = vmul.f32 %v973_v26, %v961_v18  ;;  %v977_v60 = vmul.f32 %v973_v26, %v962_v0 }
 0x498   :  { %v982_v62 = vrot.slane %v974_v29, 4  ;;  %v983_v3 = vrot.slane %v975_v25, 4  ;;  %v984_v34 = vrot.slane %v976_v38, 4  ;;  %v985_v63 = vrot.slane %v977_v60, 4 }
 0x49a   :  { %v990_v10 = vadd.f32 %v982_v62, %v974_v29  ;;  %v991_v2 = vadd.f32 %v983_v3, %v975_v25  ;;  %v992_v46 = vadd.f32 %v984_v34, %v976_v38  ;;  %v993_v27 = vadd.f32 %v985_v63, %v977_v60 }
 0x49c   :  { %v995_v56 = vmax.f32 %v991_v2, 0.0  ;;  %v997_v20 = vmax.f32 %v993_v27, 0.0  ;;  %v994_v61 = vmax.f32 %v990_v10, 0.0  ;;  %v996_v43 = vmax.f32 %v992_v46, 0.0 }
 0x49e   :  { %v1000_v1 = vrot.slane %v995_v56, 4  ;;  %v1007_v33 = vrot.slane %v997_v20, 4 }
 0x4a0   :  { %v1002_v44 = vsel %vm1001_vm10, %v994_v61, %v1000_v1  ;;  %v1008_v30 = vsel %vm1001_vm10, %v996_v43, %v1007_v33 }
 0x4a1   :  { %1004 = vst [vmem:[#allocation7] sm:$0xff] %v1002_v44 }
 0x4a2   :  { %1011 = vst [vmem:[#allocation7 + $0x8] sm:$0xff] %v1008_v30 }
 0x4a3   :  { %1024 = dma.vmem_to_hbm [thread:$0]  %s1017_s22, 256, %s1019_s25, [#allocation4], %s1171_s26, %s1171_s26, %s1172_s27  }
 0x4a4   :  { %1157 = dma.done.wait [#allocation4], 256  }
 0x4a5   :  { %1158 = vsyncadd [#allocation4], 4294967040 }
 0x4a6   :  { %1029 = vsyncpa [#allocation3], 1 }
 0x4a7   :  { %1030 = vsyncpa [#allocation6], 1 }
 0x4a8   :  { %1031 = vsyncpa [#allocation4], 1 }

</bundles_post_ra>
